<compile_context>
chip_gen: v5e
topology: v5e:2x2
jax: 0.10.0
libtpu: 0.0.40
codegen_flags: <defaults>
</compile_context>

<pallas_src>
import functools

import jax
import jax.numpy as jnp
from jax.experimental import pallas as pl
from jax.experimental.pallas import tpu as pltpu

HEAD_LANES = 128  # lane-dense fused head width: [mean | std | zero pad]


def _softplus(x):
    # Numerically stable softplus, matches torch.nn.functional.softplus.
    return jnp.maximum(x, 0.0) + jnp.log1p(jnp.exp(-jnp.abs(x)))


def _round_up(n, m):
    return ((n + m - 1) // m) * m


def policy_net_kernel(x_ref, w1_ref, b1_ref, w2_ref, b2_ref,
                      wh_ref, bh_ref, out_ref, *, n_actions, bf16_dots):
    """One batch tile: x [TB,S] -> out [TB,128] (lanes [:A]=mean, [A:2A]=std)."""
    x = x_ref[...]                                             # [TB, S]
    w1 = w1_ref[...]
    w2 = w2_ref[...]
    wh = wh_ref[...]
    if bf16_dots:
        # MXU fast path on v6e/v7x: bf16 operands, f32 accumulation.
        x, w1, w2, wh = (t.astype(jnp.bfloat16) for t in (x, w1, w2, wh))

    h1 = jnp.dot(x, w1, preferred_element_type=jnp.float32)
    h1 = jnp.maximum(h1 + b1_ref[...], 0.0)                    # [TB, H] relu (f32)
    if bf16_dots:
        h1 = h1.astype(jnp.bfloat16)

    h2 = jnp.dot(h1, w2, preferred_element_type=jnp.float32)
    h2 = jnp.maximum(h2 + b2_ref[...], 0.0)                    # [TB, H] relu (f32)
    if bf16_dots:
        h2 = h2.astype(jnp.bfloat16)

    # Fused, lane-padded mean/std head: one matmul producing [TB, 128].
    z = jnp.dot(h2, wh, preferred_element_type=jnp.float32) + bh_ref[...]

    # Lane-indexed select: lanes [0, A) -> tanh (mean), lanes >= A -> softplus.
    # Pad lanes (>= 2A) compute softplus(0)=ln2; harmless, sliced off in wrapper.
    lane = jax.lax.broadcasted_iota(jnp.int32, z.shape, 1)
    out_ref[...] = jnp.where(lane < n_actions, jnp.tanh(z), _softplus(z))


def prepare_params(params):
    """Fuse the two head projections and zero-pad to 128 lanes. Do this ONCE."""
    n_hiddens, n_actions = params["wm"].shape
    pad = HEAD_LANES - 2 * n_actions
    assert pad >= 0, "2*n_actions must fit in 128 lanes"
    wh = jnp.concatenate(
        [params["wm"], params["ws"], jnp.zeros((n_hiddens, pad), jnp.float32)],
        axis=1)
    bh = jnp.concatenate(
        [params["bm"], params["bs"], jnp.zeros((1, pad), jnp.float32)], axis=1)
    return {"w1": params["w1"], "b1": params["b1"],
            "w2": params["w2"], "b2": params["b2"], "wh": wh, "bh": bh}


@functools.partial(jax.jit, static_argnames=("n_actions", "tb", "bf16_dots"))
def policy_net_forward(x, prep, *, n_actions, tb=2048, bf16_dots=False):
    """x: [B, n_states] f32. prep: output of prepare_params. Returns (mean, std)."""
    B, n_states = x.shape
    n_hiddens = prep["w1"].shape[1]

    # --- batch-tile selection ----------------------------------------------
    # Big tiles: the kernel is per-grid-step-overhead bound at these tiny dims.
    # Cap by a conservative scoped-VMEM budget (double-buffered x/out + h1/h2),
    # and keep >=2 grid steps when the batch allows so v7x megacore can shard
    # the parallel batch axis (costs one extra ~0.35us step on v5e/v6e only).
    b8 = _round_up(B, 8)
    per_row_bytes = 2 * 4 * (n_states + HEAD_LANES) + 2 * 4 * n_hiddens
    vmem_budget = 12 * 1024 * 1024        # safe vs 16 MiB (v5e) scoped default
    tb_cap = max(8, (vmem_budget // per_row_bytes) // 8 * 8)
    TB = min(tb, tb_cap, b8)
    TB = max(8, (TB // 8) * 8)
    if b8 // TB < 2 and b8 >= 16:
        TB = _round_up(pl.cdiv(b8, 2), 8)  # 2-step floor for v7x megacore
    Bp = _round_up(B, TB)
    if Bp != B:
        x = jnp.pad(x, ((0, Bp - B), (0, 0)))
    grid = (Bp // TB,)

    # --- specs ---------------------------------------------------------------
    # x / out tiled over batch; weights & biases pinned with constant index_maps
    # so they stay VMEM-resident across all grid steps (one DMA each).
    in_specs = [
        pl.BlockSpec((TB, n_states), lambda i: (i, 0)),           # x tile
        pl.BlockSpec((n_states, n_hiddens), lambda i: (0, 0)),    # w1
        pl.BlockSpec((1, n_hiddens), lambda i: (0, 0)),           # b1
        pl.BlockSpec((n_hiddens, n_hiddens), lambda i: (0, 0)),   # w2
        pl.BlockSpec((1, n_hiddens), lambda i: (0, 0)),           # b2
        pl.BlockSpec((n_hiddens, HEAD_LANES), lambda i: (0, 0)),  # w_head (fused+padded)
        pl.BlockSpec((1, HEAD_LANES), lambda i: (0, 0)),          # b_head (fused+padded)
    ]
    out_specs = pl.BlockSpec((TB, HEAD_LANES), lambda i: (i, 0))

    cost = pl.CostEstimate(
        flops=2 * Bp * (n_states * n_hiddens
                        + n_hiddens * n_hiddens
                        + n_hiddens * HEAD_LANES),
        transcendentals=2 * Bp * HEAD_LANES,
        bytes_accessed=4 * (Bp * n_states + Bp * HEAD_LANES
                            + n_states * n_hiddens + n_hiddens
                            + n_hiddens * n_hiddens + n_hiddens
                            + n_hiddens * HEAD_LANES + HEAD_LANES),
    )

    out = pl.pallas_call(
        functools.partial(policy_net_kernel, n_actions=n_actions,
                          bf16_dots=bf16_dots),
        grid=grid,
        in_specs=in_specs,
        out_specs=out_specs,
        out_shape=jax.ShapeDtypeStruct((Bp, HEAD_LANES), jnp.float32),
        compiler_params=pltpu.CompilerParams(
            dimension_semantics=("parallel",)),  # megacore batch sharding (v7x)
        cost_estimate=cost,
    )(x, prep["w1"], prep["b1"], prep["w2"], prep["b2"],
      prep["wh"], prep["bh"])

    mean = out[:B, :n_actions]
    std = out[:B, n_actions:2 * n_actions]
    return mean, std


def init_params(key, n_states, n_hiddens, n_actions):
    """Deterministic init mimicking nn.Linear's uniform(-1/sqrt(fan_in), ...)."""
    def linear(k, fan_in, fan_out):
        kw, kb = jax.random.split(k)
        bound = 1.0 / jnp.sqrt(fan_in)
        # stored as [in, out] (transposed vs. PyTorch nn.Linear's [out, in])
        w = jax.random.uniform(kw, (fan_in, fan_out), jnp.float32, -bound, bound)
        b = jax.random.uniform(kb, (1, fan_out), jnp.float32, -bound, bound)
        return w, b

    k1, k2, k3, k4 = jax.random.split(key, 4)
    w1, b1 = linear(k1, n_states, n_hiddens)
    w2, b2 = linear(k2, n_hiddens, n_hiddens)
    wm, bm = linear(k3, n_hiddens, n_actions)
    ws, bs = linear(k4, n_hiddens, n_actions)
    return {"w1": w1, "b1": b1, "w2": w2, "b2": b2,
            "wm": wm, "bm": bm, "ws": ws, "bs": bs}


def reference_forward(x, p):
    h1 = jnp.maximum(x @ p["w1"] + p["b1"], 0.0)
    h2 = jnp.maximum(h1 @ p["w2"] + p["b2"], 0.0)
    mean = jnp.tanh(h2 @ p["wm"] + p["bm"])
    std = jax.nn.softplus(h2 @ p["ws"] + p["bs"])
    return mean, std


if __name__ == "__main__":
    key = jax.random.PRNGKey(0)
    k_x, k_p = jax.random.split(key)

    n_states, n_hiddens, n_actions = 16, 32, 4
    params = init_params(k_p, n_states, n_hiddens, n_actions)
    prep = prepare_params(params)  # fuse + lane-pad head ONCE (hoisted)

    # Multi-tile batch (exercises the grid / resident weights / >=2-step floor).
    batch = 256
    x = jax.random.normal(k_x, (batch, n_states), jnp.float32)
    mean, std = policy_net_forward(x, prep, n_actions=n_actions)
    jax.block_until_ready((mean, std))

    mean_ref, std_ref = reference_forward(x, params)
    assert mean.shape == (batch, n_actions) and std.shape == (batch, n_actions)
    assert jnp.allclose(mean, mean_ref, atol=1e-5, rtol=1e-5)
    assert jnp.allclose(std, std_ref, atol=1e-5, rtol=1e-5)
    assert bool(jnp.all(std > 0))

    # Ragged / small batch (exercises the padding path, grid=1).
    x_small = jax.random.normal(jax.random.PRNGKey(1), (6, n_states), jnp.float32)
    mean_s, std_s = policy_net_forward(x_small, prep, n_actions=n_actions)
    jax.block_until_ready((mean_s, std_s))
    mean_s_ref, std_s_ref = reference_forward(x_small, params)
    assert mean_s.shape == (6, n_actions) and std_s.shape == (6, n_actions)
    assert jnp.allclose(mean_s, mean_s_ref, atol=1e-5, rtol=1e-5)
    assert jnp.allclose(std_s, std_s_ref, atol=1e-5, rtol=1e-5)

    # bf16 MXU-input path (opt-in; looser tolerance, large-batch lever on v6e/v7x).
    mean_b, std_b = policy_net_forward(x, prep, n_actions=n_actions, bf16_dots=True)
    jax.block_until_ready((mean_b, std_b))
    assert jnp.allclose(mean_b, mean_ref, atol=2e-2, rtol=2e-2)
    assert jnp.allclose(std_b, std_ref, atol=2e-2, rtol=2e-2)

    print("KERNEL_OK")
</pallas_src>

<mosaic_0001>
module attributes {stable_mosaic.version = 11 : i64} {
  func.func @policy_net_kernel(%arg0: i32, %arg1: memref<128x16xf32, #tpu.memory_space<vmem>>, %arg2: memref<16x32xf32, #tpu.memory_space<vmem>>, %arg3: memref<1x32xf32, #tpu.memory_space<vmem>>, %arg4: memref<32x32xf32, #tpu.memory_space<vmem>>, %arg5: memref<1x32xf32, #tpu.memory_space<vmem>>, %arg6: memref<32x128xf32, #tpu.memory_space<vmem>>, %arg7: memref<1x128xf32, #tpu.memory_space<vmem>>, %arg8: memref<128x128xf32, #tpu.memory_space<vmem>>) attributes {dimension_semantics = [#tpu.dimension_semantics<parallel>], iteration_bounds = array<i64: 2>, scalar_prefetch = 0 : i64, scratch_operands = 0 : i64, tpu.core_type = #tpu.core_type<tc>, window_params = [{transform_indices = @transform_0, window_bounds = array<i64: 128, 16>}, {pipeline_mode = #tpu.pipeline_mode<synchronous>, transform_indices = @transform_1, window_bounds = array<i64: 16, 32>}, {pipeline_mode = #tpu.pipeline_mode<synchronous>, transform_indices = @transform_2, window_bounds = array<i64: 1, 32>}, {pipeline_mode = #tpu.pipeline_mode<synchronous>, transform_indices = @transform_3, window_bounds = array<i64: 32, 32>}, {pipeline_mode = #tpu.pipeline_mode<synchronous>, transform_indices = @transform_4, window_bounds = array<i64: 1, 32>}, {pipeline_mode = #tpu.pipeline_mode<synchronous>, transform_indices = @transform_5, window_bounds = array<i64: 32, 128>}, {pipeline_mode = #tpu.pipeline_mode<synchronous>, transform_indices = @transform_6, window_bounds = array<i64: 1, 128>}, {transform_indices = @transform_7, window_bounds = array<i64: 128, 128>}]} {
    %c0 = arith.constant 0 : index
    %c0_0 = arith.constant 0 : index
    %0 = vector.load %arg1[%c0, %c0_0] : memref<128x16xf32, #tpu.memory_space<vmem>>, vector<128x16xf32>
    %c0_1 = arith.constant 0 : index
    %c0_2 = arith.constant 0 : index
    %1 = vector.load %arg2[%c0_1, %c0_2] : memref<16x32xf32, #tpu.memory_space<vmem>>, vector<16x32xf32>
    %c0_3 = arith.constant 0 : index
    %c0_4 = arith.constant 0 : index
    %2 = vector.load %arg4[%c0_3, %c0_4] : memref<32x32xf32, #tpu.memory_space<vmem>>, vector<32x32xf32>
    %c0_5 = arith.constant 0 : index
    %c0_6 = arith.constant 0 : index
    %3 = vector.load %arg6[%c0_5, %c0_6] : memref<32x128xf32, #tpu.memory_space<vmem>>, vector<32x128xf32>
    %cst = arith.constant dense<0.000000e+00> : vector<128x32xf32>
    %4 = tpu.matmul %0, %1, %cst {dimension_numbers = #tpu.dot_dimension_numbers<[1], [0], [0], [1], [0, 0, 1, 1], [], []>} : vector<128x16xf32>, vector<16x32xf32>, vector<128x32xf32> -> vector<128x32xf32>
    %c0_7 = arith.constant 0 : index
    %c0_8 = arith.constant 0 : index
    %5 = vector.load %arg3[%c0_7, %c0_8] : memref<1x32xf32, #tpu.memory_space<vmem>>, vector<1x32xf32>
    %6 = vector.broadcast %5 : vector<1x32xf32> to vector<128x32xf32>
    %7 = arith.addf %4, %6 : vector<128x32xf32>
    %cst_9 = arith.constant 0.000000e+00 : f32
    %8 = vector.broadcast %cst_9 : f32 to vector<128x32xf32>
    %9 = arith.maximumf %7, %8 : vector<128x32xf32>
    %cst_10 = arith.constant dense<0.000000e+00> : vector<128x32xf32>
    %10 = tpu.matmul %9, %2, %cst_10 {dimension_numbers = #tpu.dot_dimension_numbers<[1], [0], [0], [1], [0, 0, 1, 1], [], []>} : vector<128x32xf32>, vector<32x32xf32>, vector<128x32xf32> -> vector<128x32xf32>
    %c0_11 = arith.constant 0 : index
    %c0_12 = arith.constant 0 : index
    %11 = vector.load %arg5[%c0_11, %c0_12] : memref<1x32xf32, #tpu.memory_space<vmem>>, vector<1x32xf32>
    %12 = vector.broadcast %11 : vector<1x32xf32> to vector<128x32xf32>
    %13 = arith.addf %10, %12 : vector<128x32xf32>
    %cst_13 = arith.constant 0.000000e+00 : f32
    %14 = vector.broadcast %cst_13 : f32 to vector<128x32xf32>
    %15 = arith.maximumf %13, %14 : vector<128x32xf32>
    %cst_14 = arith.constant dense<0.000000e+00> : vector<128x128xf32>
    %16 = tpu.matmul %15, %3, %cst_14 {dimension_numbers = #tpu.dot_dimension_numbers<[1], [0], [0], [1], [0, 0, 1, 1], [], []>} : vector<128x32xf32>, vector<32x128xf32>, vector<128x128xf32> -> vector<128x128xf32>
    %c0_15 = arith.constant 0 : index
    %c0_16 = arith.constant 0 : index
    %17 = vector.load %arg7[%c0_15, %c0_16] : memref<1x128xf32, #tpu.memory_space<vmem>>, vector<1x128xf32>
    %18 = vector.broadcast %17 : vector<1x128xf32> to vector<128x128xf32>
    %19 = arith.addf %16, %18 : vector<128x128xf32>
    %20 = tpu.iota {dimensions = array<i32: 1>} : vector<128x128xi32>
    %c4_i32 = arith.constant 4 : i32
    %21 = vector.broadcast %c4_i32 : i32 to vector<128x128xi32>
    %22 = arith.cmpi slt, %20, %21 : vector<128x128xi32>
    %23 = math.tanh %19 : vector<128x128xf32>
    %cst_17 = arith.constant 0.000000e+00 : f32
    %24 = vector.broadcast %cst_17 : f32 to vector<128x128xf32>
    %25 = arith.maximumf %19, %24 : vector<128x128xf32>
    %26 = math.absf %19 : vector<128x128xf32>
    %cst_18 = arith.constant 0.000000e+00 : f32
    %27 = vector.broadcast %cst_18 : f32 to vector<128x128xf32>
    %28 = arith.subf %27, %26 : vector<128x128xf32>
    %29 = math.exp %28 : vector<128x128xf32>
    %30 = math.log1p %29 : vector<128x128xf32>
    %31 = arith.addf %25, %30 : vector<128x128xf32>
    %32 = arith.select %22, %23, %31 : vector<128x128xi1>, vector<128x128xf32>
    %c0_19 = arith.constant 0 : index
    %c0_20 = arith.constant 0 : index
    %33 = vector.load %arg8[%c0_19, %c0_20] : memref<128x128xf32, #tpu.memory_space<vmem>>, vector<128x128xf32>
    tpu.vector_store %arg8[%c0_19, %c0_20], %32 {strides = array<i32>} : memref<128x128xf32, #tpu.memory_space<vmem>>, vector<128x128xf32>,
    return
  }
  func.func @transform_0(%arg0: i32) -> (i32, i32) {
    %c0_i32 = arith.constant 0 : i32
    %c0_i32_0 = arith.constant 0 : i32
    return %arg0, %c0_i32 : i32, i32
  }
  func.func @transform_1(%arg0: i32) -> (i32, i32) {
    %c0_i32 = arith.constant 0 : i32
    %c0_i32_0 = arith.constant 0 : i32
    %c0_i32_1 = arith.constant 0 : i32
    return %c0_i32, %c0_i32_0 : i32, i32
  }
  func.func @transform_2(%arg0: i32) -> (i32, i32) {
    %c0_i32 = arith.constant 0 : i32
    %c0_i32_0 = arith.constant 0 : i32
    %c0_i32_1 = arith.constant 0 : i32
    return %c0_i32, %c0_i32_0 : i32, i32
  }
  func.func @transform_3(%arg0: i32) -> (i32, i32) {
    %c0_i32 = arith.constant 0 : i32
    %c0_i32_0 = arith.constant 0 : i32
    %c0_i32_1 = arith.constant 0 : i32
    return %c0_i32, %c0_i32_0 : i32, i32
  }
  func.func @transform_4(%arg0: i32) -> (i32, i32) {
    %c0_i32 = arith.constant 0 : i32
    %c0_i32_0 = arith.constant 0 : i32
    %c0_i32_1 = arith.constant 0 : i32
    return %c0_i32, %c0_i32_0 : i32, i32
  }
  func.func @transform_5(%arg0: i32) -> (i32, i32) {
    %c0_i32 = arith.constant 0 : i32
    %c0_i32_0 = arith.constant 0 : i32
    %c0_i32_1 = arith.constant 0 : i32
    return %c0_i32, %c0_i32_0 : i32, i32
  }
  func.func @transform_6(%arg0: i32) -> (i32, i32) {
    %c0_i32 = arith.constant 0 : i32
    %c0_i32_0 = arith.constant 0 : i32
    %c0_i32_1 = arith.constant 0 : i32
    return %c0_i32, %c0_i32_0 : i32, i32
  }
  func.func @transform_7(%arg0: i32) -> (i32, i32) {
    %c0_i32 = arith.constant 0 : i32
    %c0_i32_0 = arith.constant 0 : i32
    return %arg0, %c0_i32 : i32, i32
  }
}

</mosaic_0001>

<bundles_post_ra>
// kernel: policy_net_forward.1
= control target key start
LH: loop header
LB: loop body
LE: loop exit
PB: predicated region body
PF: predicated region fallthrough
CT: control target
= control target key end

     0   :  { %s1264_s24 = smov 0   ;;  %s1537_s0 = inlined_call_operand.vmem [shape: f32[256,16], index: 0, kind: input, shape index: {}]   ;;  %s1538_s1 = inlined_call_operand.vmem [shape: f32[16,32], index: 1, kind: input, shape index: {}]   ;;  %s1539_s2 = inlined_call_operand.vmem [shape: f32[1,32], index: 2, kind: input, shape index: {}]   ;;  %s1540_s3 = inlined_call_operand.vmem [shape: f32[32,32], index: 3, kind: input, shape index: {}]   ;;  %s1541_s4 = inlined_call_operand.vmem [shape: f32[1,32], index: 4, kind: input, shape index: {}]   ;;  %s1542_s5 = inlined_call_operand.vmem [shape: f32[32,128], index: 5, kind: input, shape index: {}]   ;;  %s1543_s6 = inlined_call_operand.vmem [shape: f32[1,128], index: 6, kind: input, shape index: {}]   ;;  %s1544_s7 = inlined_call_operand.vmem [shape: f32[256,128], index: 7, kind: output, shape index: {}]  }
   0x1 LB: > { %s1040_s25 = sadd.s32 4294967295, %s1222_s24   ;;  %p1044_p0 = scmp.ge.s32.totalorder %s1222_s24, 1  ;;  %s1222_s24 = sphi %s1264_s24, %s17_s24  }
   0x2   : > { %p238_p1 = scmp.lt.s32.totalorder %s1222_s24, 3 }
   0x4   : > { %p239_p2 = pnand %p1044_p0, %p238_p1 }
   0x5   : > { %s1045_s30 = sshll.u32 (!%p239_p2), %s1040_s25, 4 }
   0x6   : > { %242 = sbr.rel (%p239_p2) target bundleno = 564 (0x234), region = 48  ;;  %p271_p3 = scmp.lt.s32.totalorder (!%p239_p2), %s1045_s30, 31 }
   0xb   : > { %v299_v0 = vld [vmem:[%s1538_s1 + $0x8] sm:$0xff]  ;;  %v298_v1 = vld [vmem:[%s1538_s1] sm:$0xff]  ;;  %s1546_s30 = smov (!%p271_p3, %s1045_s30), 31  ;;  %vm312_vm0 = vcmask 130048   ;;  %v303_v12 = vld [vmem:[%s1540_s3 + $0x18] sm:$0xff]  ;;  %vm446_vm1 = vcmask 261120  }
   0xc   : > { %375 = vmatpush.msra.mxu0 %v299_v0  ;;  %1099 = vmatpush.msra.mxu3 %v299_v0  ;;  %s1046_s8 = sshll.u32 %s1546_s30, 3  ;;  %v302_v18 = vld [vmem:[%s1540_s3 + $0x10] sm:$0xff]  ;;  %v301_v20 = vld [vmem:[%s1540_s3 + $0x8] sm:$0xff]  ;;  %v300_v21 = vld [vmem:[%s1540_s3] sm:$0xff] }
   0xd   : > { %s1286_s11 = scalar_lea.vmem %s1537_s0, %s1046_s8  ;;  %507 = vmatpush.msra.mxu1 %v303_v12  ;;  %v1335_v22 = vld [vmem:[%s1539_s2] ss:$0 sm:$0xff]  ;;  %v307_v59 = vld [vmem:[%s1542_s5 + $0x18] sm:$0xff]  ;;  %v306_v63 = vld [vmem:[%s1542_s5 + $0x10] sm:$0xff]  ;;  %s1423_s16 = scalar_lea.vmem %s1544_s7, %s1046_s8 }
   0xe   : > { %376 = vmatpush.msra.mxu0 %v298_v1  ;;  %1100 = vmatpush.msra.mxu3 %v298_v1  ;;  %v282_v2 = vld [vmem:[%s1286_s11] sm:$0xff]  ;;  %v283_v3 = vld [vmem:[%s1286_s11 + $0x8] sm:$0xff]  ;;  %v284_v4 = vld [vmem:[%s1286_s11 + $0x10] sm:$0xff] }
   0xf   : > { %1049 = vmatmul.msk.f32.vlgmr.msra.gmra.mxu0 %vm312_vm0, %v282_v2  ;;  %v285_v5 = vld [vmem:[%s1286_s11 + $0x18] sm:$0xff]  ;;  %v286_v6 = vld [vmem:[%s1286_s11 + $0x20] sm:$0xff]  ;;  %v287_v7 = vld [vmem:[%s1286_s11 + $0x28] sm:$0xff]  ;;  %508 = vmatpush.msra.mxu1 %v302_v18 }
  0x10   : > { %v288_v8 = vld [vmem:[%s1286_s11 + $0x30] sm:$0xff]  ;;  %v289_v9 = vld [vmem:[%s1286_s11 + $0x38] sm:$0xff]  ;;  %v290_v10 = vld [vmem:[%s1286_s11 + $0x40] sm:$0xff]  ;;  %1101 = vmatpush.msrb.mxu3 %v303_v12  ;;  %640 = vmatpush.msra.mxu2 %v307_v59 }
  0x11   : > { %v295_v11 = vld [vmem:[%s1286_s11 + $0x68] sm:$0xff]  ;;  %v296_v14 = vld [vmem:[%s1286_s11 + $0x70] sm:$0xff]  ;;  %v297_v16 = vld [vmem:[%s1286_s11 + $0x78] sm:$0xff]  ;;  %509 = vmatpush.msra.mxu1 %v301_v20 }
  0x12   : > { %1062 = vmatmul.msk.f32.vlgmr.msra.gmra.mxu3 %vm312_vm0, %v295_v11  ;;  %v291_v13 = vld [vmem:[%s1286_s11 + $0x48] sm:$0xff]  ;;  %v292_v15 = vld [vmem:[%s1286_s11 + $0x50] sm:$0xff]  ;;  %v293_v17 = vld [vmem:[%s1286_s11 + $0x58] sm:$0xff]  ;;  %641 = vmatpush.msra.mxu2 %v306_v63 }
  0x13   : > { %v294_v19 = vld [vmem:[%s1286_s11 + $0x60] sm:$0xff]  ;;  %1102 = vmatpush.msrb.mxu3 %v302_v18  ;;  %510 = vmatpush.msra.mxu1 %v300_v21  ;;  %v305_v1 = vld [vmem:[%s1542_s5 + $0x8] sm:$0xff] }
  0x14   : > { %642 = vmatpush.msra.mxu2 %v305_v1  ;;  %v1118_v11 = vld [vmem:[%s1541_s4] ss:$0 sm:$0xff] }
  0x15   : > { %1103 = vmatpush.msrb.mxu3 %v301_v20 }
  0x17   : > { %1050 = vmatmul.msk.f32.gmra.mxu0 %vm312_vm0, %v283_v3  ;;  %1104 = vmatpush.msrb.mxu3 %v300_v21  ;;  %v304_v3 = vld [vmem:[%s1542_s5] sm:$0xff] }
  0x18   : > { %643 = vmatpush.msra.mxu2 %v304_v3 }
  0x19   : > { %1105 = vmatpush.msra.mxu3 %v307_v59 }
  0x1a   : > { %1063 = vmatmul.msk.f32.gmra.mxu3 %vm312_vm0, %v296_v14 }
  0x1b   : > { %1106 = vmatpush.msra.mxu3 %v306_v63 }
  0x1d   : > { %1107 = vmatpush.msra.mxu3 %v305_v1 }
  0x1f   : > { %1051 = vmatmul.msk.f32.gmra.mxu0 %vm312_vm0, %v284_v4  ;;  %1108 = vmatpush.msra.mxu3 %v304_v3 }
  0x22   : > { %1064 = vmatmul.msk.f32.gmra.mxu3 %vm312_vm0, %v297_v16 }
  0x27   : > { %1052 = vmatmul.msk.f32.gmra.mxu0 %vm312_vm0, %v285_v5 }
  0x2f   : > { %1053 = vmatmul.msk.f32.gmra.mxu0 %vm312_vm0, %v286_v6 }
  0x37   : > { %1054 = vmatmul.msk.f32.gmra.mxu0 %vm312_vm0, %v287_v7 }
  0x3f   : > { %1055 = vmatmul.msk.f32.gmra.mxu0 %vm312_vm0, %v288_v8 }
  0x47   : > { %1056 = vmatmul.msk.f32.gmra.mxu0 %vm312_vm0, %v289_v9 }
  0x4f   : > { %1057 = vmatmul.msk.f32.gmra.mxu0 %vm312_vm0, %v290_v10 }
  0x57   : > { %1058 = vmatmul.msk.f32.gmra.mxu0 %vm312_vm0, %v291_v13 }
  0x5f   : > { %1059 = vmatmul.msk.f32.gmra.mxu0 %vm312_vm0, %v292_v15 }
  0x67   : > { %1060 = vmatmul.msk.f32.gmra.mxu0 %vm312_vm0, %v293_v17 }
  0x6f   : > { %1061 = vmatmul.msk.f32.gmra.mxu0 %vm312_vm0, %v294_v19 }
  0x8c   : > { %v378_v23 = vpop.f32.mrf.mxu0 }
  0x8d   : > { %v379_v24 = vadd.f32 %v1335_v22, %v378_v23 }
  0x8f   : > { %v426_v25 = vmax.f32 %v379_v24, 0.0 }
  0x91   : > { %1065 = vmatmul.msk.f32.vlgmr.msra.gmra.mxu1 %vm446_vm1, %v426_v25 }
  0x94   : > { %v381_v26 = vpop.f32.mrf.mxu0 }
  0x95   : > { %v382_v27 = vadd.f32 %v1335_v22, %v381_v26  ;;  %v417_v60 = vpop.f32.mrf.mxu3 }
  0x96   : > { %v418_v2 = vadd.f32 %v1335_v22, %v417_v60  ;;  %v1403_v60 = vld [vmem:[%s1543_s6] ss:$0 sm:$0xff] }
  0x97   : > { %v427_v28 = vmax.f32 %v382_v27, 0.0 }
  0x98   : > { %v439_v5 = vmax.f32 %v418_v2, 0.0 }
  0x99   : > { %1066 = vmatmul.msk.f32.gmra.mxu1 %vm446_vm1, %v427_v28 }
  0x9c   : > { %v384_v29 = vpop.f32.mrf.mxu0 }
  0x9d   : > { %v385_v30 = vadd.f32 %v1335_v22, %v384_v29  ;;  %v420_v4 = vpop.f32.mrf.mxu3 }
  0x9e   : > { %v421_v6 = vadd.f32 %v1335_v22, %v420_v4 }
  0x9f   : > { %v428_v31 = vmax.f32 %v385_v30, 0.0 }
  0xa0   : > { %v440_v7 = vmax.f32 %v421_v6, 0.0 }
  0xa1   : > { %1067 = vmatmul.msk.f32.gmra.mxu1 %vm446_vm1, %v428_v31 }
  0xa4   : > { %v387_v32 = vpop.f32.mrf.mxu0 }
  0xa5   : > { %v388_v33 = vadd.f32 %v1335_v22, %v387_v32  ;;  %v423_v8 = vpop.f32.mrf.mxu3 }
  0xa6   : > { %v424_v9 = vadd.f32 %v1335_v22, %v423_v8 }
  0xa7   : > { %v429_v34 = vmax.f32 %v388_v33, 0.0 }
  0xa8   : > { %v441_v10 = vmax.f32 %v424_v9, 0.0 }
  0xa9   : > { %1068 = vmatmul.msk.f32.gmra.mxu1 %vm446_vm1, %v429_v34 }
  0xac   : > { %v390_v35 = vpop.f32.mrf.mxu0 }
  0xad   : > { %v391_v36 = vadd.f32 %v1335_v22, %v390_v35 }
  0xaf   : > { %v430_v37 = vmax.f32 %v391_v36, 0.0 }
  0xb1   : > { %1069 = vmatmul.msk.f32.gmra.mxu1 %vm446_vm1, %v430_v37 }
  0xb4   : > { %v393_v38 = vpop.f32.mrf.mxu0 }
  0xb5   : > { %v394_v39 = vadd.f32 %v1335_v22, %v393_v38 }
  0xb7   : > { %v431_v40 = vmax.f32 %v394_v39, 0.0 }
  0xb9   : > { %1070 = vmatmul.msk.f32.gmra.mxu1 %vm446_vm1, %v431_v40 }
  0xbc   : > { %v396_v41 = vpop.f32.mrf.mxu0 }
  0xbd   : > { %v397_v42 = vadd.f32 %v1335_v22, %v396_v41 }
  0xbf   : > { %v432_v43 = vmax.f32 %v397_v42, 0.0 }
  0xc1   : > { %1071 = vmatmul.msk.f32.gmra.mxu1 %vm446_vm1, %v432_v43 }
  0xc4   : > { %v399_v44 = vpop.f32.mrf.mxu0 }
  0xc5   : > { %v400_v45 = vadd.f32 %v1335_v22, %v399_v44 }
  0xc7   : > { %v433_v46 = vmax.f32 %v400_v45, 0.0 }
  0xc9   : > { %1072 = vmatmul.msk.f32.gmra.mxu1 %vm446_vm1, %v433_v46 }
  0xcc   : > { %v402_v47 = vpop.f32.mrf.mxu0 }
  0xcd   : > { %v403_v48 = vadd.f32 %v1335_v22, %v402_v47 }
  0xcf   : > { %v434_v49 = vmax.f32 %v403_v48, 0.0 }
  0xd1   : > { %1073 = vmatmul.msk.f32.gmra.mxu1 %vm446_vm1, %v434_v49 }
  0xd4   : > { %v405_v50 = vpop.f32.mrf.mxu0 }
  0xd5   : > { %v406_v51 = vadd.f32 %v1335_v22, %v405_v50 }
  0xd7   : > { %v435_v52 = vmax.f32 %v406_v51, 0.0 }
  0xd9   : > { %1074 = vmatmul.msk.f32.gmra.mxu1 %vm446_vm1, %v435_v52 }
  0xdc   : > { %v408_v53 = vpop.f32.mrf.mxu0 }
  0xdd   : > { %v409_v54 = vadd.f32 %v1335_v22, %v408_v53 }
  0xdf   : > { %v436_v55 = vmax.f32 %v409_v54, 0.0 }
  0xe1   : > { %1075 = vmatmul.msk.f32.gmra.mxu1 %vm446_vm1, %v436_v55 }
  0xe4   : > { %v411_v56 = vpop.f32.mrf.mxu0 }
  0xe5   : > { %v412_v57 = vadd.f32 %v1335_v22, %v411_v56 }
  0xe7   : > { %v437_v58 = vmax.f32 %v412_v57, 0.0 }
  0xe9   : > { %1076 = vmatmul.msk.f32.gmra.mxu1 %vm446_vm1, %v437_v58 }
  0xec   : > { %v414_v61 = vpop.f32.mrf.mxu0 }
  0xed   : > { %v415_v62 = vadd.f32 %v1335_v22, %v414_v61 }
  0xef   : > { %v438_v0 = vmax.f32 %v415_v62, 0.0 }
  0xf1   : > { %1077 = vmatmul.msk.f32.vlgmr.msrb.gmra.mxu3 %vm446_vm1, %v438_v0 }
  0xf9   : > { %1078 = vmatmul.msk.f32.gmra.mxu3 %vm446_vm1, %v439_v5 }
 0x101   : > { %1079 = vmatmul.msk.f32.gmra.mxu3 %vm446_vm1, %v440_v7 }
 0x109   : > { %1080 = vmatmul.msk.f32.gmra.mxu3 %vm446_vm1, %v441_v10 }
 0x10e   : > { %v512_v12 = vpop.f32.mrf.mxu1 }
 0x10f   : > { %v513_v13 = vadd.f32 %v1118_v11, %v512_v12  ;;  %v693_v12 = vlaneseq }
 0x111   : > { %v560_v14 = vmax.f32 %v513_v13, 0.0 }
 0x113   : > { %1081 = vmatmul.msk.f32.vlgmr.msra.gmra.mxu2 %vm446_vm1, %v560_v14 }
 0x116   : > { %v515_v15 = vpop.f32.mrf.mxu1 }
 0x117   : > { %v516_v16 = vadd.f32 %v1118_v11, %v515_v15 }
 0x119   : > { %v561_v17 = vmax.f32 %v516_v16, 0.0 }
 0x11b   : > { %1082 = vmatmul.msk.f32.gmra.mxu2 %vm446_vm1, %v561_v17 }
 0x11e   : > { %v518_v18 = vpop.f32.mrf.mxu1 }
 0x11f   : > { %v519_v19 = vadd.f32 %v1118_v11, %v518_v18  ;;  %v1411_v18 = vand.u32 127, %v693_v12 }
 0x121   : > { %v562_v20 = vmax.f32 %v519_v19, 0.0  ;;  %vm695_vm3 = vcmp.lt.s32.totalorder %v1411_v18, 4 }
 0x123   : > { %1083 = vmatmul.msk.f32.gmra.mxu2 %vm446_vm1, %v562_v20 }
 0x126   : > { %v521_v21 = vpop.f32.mrf.mxu1 }
 0x127   : > { %v522_v22 = vadd.f32 %v1118_v11, %v521_v21 }
 0x129   : > { %v563_v23 = vmax.f32 %v522_v22, 0.0 }
 0x12b   : > { %1084 = vmatmul.msk.f32.gmra.mxu2 %vm446_vm1, %v563_v23 }
 0x12e   : > { %v524_v24 = vpop.f32.mrf.mxu1 }
 0x12f   : > { %v525_v25 = vadd.f32 %v1118_v11, %v524_v24 }
 0x131   : > { %v564_v26 = vmax.f32 %v525_v25, 0.0 }
 0x133   : > { %1085 = vmatmul.msk.f32.gmra.mxu2 %vm446_vm1, %v564_v26 }
 0x136   : > { %v527_v27 = vpop.f32.mrf.mxu1 }
 0x137   : > { %v528_v28 = vadd.f32 %v1118_v11, %v527_v27 }
 0x139   : > { %v565_v29 = vmax.f32 %v528_v28, 0.0 }
 0x13b   : > { %1086 = vmatmul.msk.f32.gmra.mxu2 %vm446_vm1, %v565_v29 }
 0x13e   : > { %v530_v30 = vpop.f32.mrf.mxu1 }
 0x13f   : > { %v531_v31 = vadd.f32 %v1118_v11, %v530_v30 }
 0x141   : > { %v566_v32 = vmax.f32 %v531_v31, 0.0 }
 0x143   : > { %1087 = vmatmul.msk.f32.gmra.mxu2 %vm446_vm1, %v566_v32 }
 0x146   : > { %v533_v33 = vpop.f32.mrf.mxu1 }
 0x147   : > { %v534_v34 = vadd.f32 %v1118_v11, %v533_v33 }
 0x149   : > { %v567_v35 = vmax.f32 %v534_v34, 0.0 }
 0x14b   : > { %1088 = vmatmul.msk.f32.gmra.mxu2 %vm446_vm1, %v567_v35 }
 0x14e   : > { %v536_v36 = vpop.f32.mrf.mxu1 }
 0x14f   : > { %v537_v37 = vadd.f32 %v1118_v11, %v536_v36 }
 0x151   : > { %v568_v38 = vmax.f32 %v537_v37, 0.0 }
 0x153   : > { %1089 = vmatmul.msk.f32.gmra.mxu2 %vm446_vm1, %v568_v38 }
 0x156   : > { %v539_v39 = vpop.f32.mrf.mxu1 }
 0x157   : > { %v540_v40 = vadd.f32 %v1118_v11, %v539_v39 }
 0x159   : > { %v569_v41 = vmax.f32 %v540_v40, 0.0 }
 0x15b   : > { %1090 = vmatmul.msk.f32.gmra.mxu2 %vm446_vm1, %v569_v41 }
 0x15e   : > { %v542_v42 = vpop.f32.mrf.mxu1 }
 0x15f   : > { %v543_v43 = vadd.f32 %v1118_v11, %v542_v42 }
 0x161   : > { %v570_v44 = vmax.f32 %v543_v43, 0.0 }
 0x163   : > { %1091 = vmatmul.msk.f32.gmra.mxu2 %vm446_vm1, %v570_v44 }
 0x166   : > { %v545_v45 = vpop.f32.mrf.mxu1 }
 0x167   : > { %v546_v46 = vadd.f32 %v1118_v11, %v545_v45 }
 0x169   : > { %v571_v47 = vmax.f32 %v546_v46, 0.0 }
 0x16b   : > { %1092 = vmatmul.msk.f32.gmra.mxu2 %vm446_vm1, %v571_v47 }
 0x174   : > { %v548_v48 = vpop.f32.mrf.mxu3 }
 0x175   : > { %v549_v49 = vadd.f32 %v1118_v11, %v548_v48 }
 0x177   : > { %v572_v50 = vmax.f32 %v549_v49, 0.0 }
 0x179   : > { %1093 = vmatmul.msk.f32.vlgmr.msra.gmra.mxu3 %vm446_vm1, %v572_v50 }
 0x17c   : > { %v551_v51 = vpop.f32.mrf.mxu3 }
 0x17d   : > { %v552_v52 = vadd.f32 %v1118_v11, %v551_v51 }
 0x17f   : > { %v573_v53 = vmax.f32 %v552_v52, 0.0 }
 0x181   : > { %1094 = vmatmul.msk.f32.gmra.mxu3 %vm446_vm1, %v573_v53 }
 0x184   : > { %v554_v54 = vpop.f32.mrf.mxu3 }
 0x185   : > { %v555_v55 = vadd.f32 %v1118_v11, %v554_v54 }
 0x187   : > { %v574_v56 = vmax.f32 %v555_v55, 0.0 }
 0x189   : > { %1095 = vmatmul.msk.f32.gmra.mxu3 %vm446_vm1, %v574_v56 }
 0x18c   : > { %v557_v57 = vpop.f32.mrf.mxu3 }
 0x18d   : > { %v558_v58 = vadd.f32 %v1118_v11, %v557_v57 }
 0x18f   : > { %v575_v59 = vmax.f32 %v558_v58, 0.0 }
 0x191   : > { %1096 = vmatmul.msk.f32.gmra.mxu3 %vm446_vm1, %v575_v59 }
 0x196   : > { %v645_v61 = vpop.f32.mrf.mxu2 }
 0x197   : > { %v646_v62 = vadd.f32 %v1403_v60, %v645_v61 }
 0x199   : > { %v728_v63 = vand.u32 2147483647, %v646_v62  ;;  %v712_v27 = vmax.f32 %v646_v62, 0.0 }
 0x19b   : > { %v744_v0 = vsub.f32 0.0, %v728_v63 }
 0x19d   : > { %v760_v1 = vmul.f32 1.442695, %v744_v0 }
 0x19e   : > { %v648_v2 = vpop.f32.mrf.mxu2 }
 0x19f   : > { %1120 = vpow2.f32 %v760_v1  ;;  %v649_v3 = vadd.f32 %v1403_v60, %v648_v2 }
 0x1a1   : > { %v729_v4 = vand.u32 2147483647, %v649_v3  ;;  %v713_v45 = vmax.f32 %v649_v3, 0.0 }
 0x1a3   : > { %v745_v5 = vsub.f32 0.0, %v729_v4 }
 0x1a5   : > { %v1121_v6 = vpop.eup %1120  ;;  %v762_v7 = vmul.f32 1.442695, %v745_v5 }
 0x1a6   : > { %v792_v8 = vadd.f32 1.0, %v1121_v6  ;;  %v795_v9 = vmul.f32 -0.5, %v1121_v6  ;;  %v651_v10 = vpop.f32.mrf.mxu2  ;;  %v798_v16 = vand.u32 2147483647, %v1121_v6 }
 0x1a7   : > { %1122 = vpow2.f32 %v762_v7  ;;  %v1408_v11 = vadd.f32 %v1403_v60, %v651_v10 }
 0x1a8   : > { %1124 = vlog2.f32 %v792_v8  ;;  %v796_v14 = vadd.f32 1.0, %v795_v9  ;;  %vm799_vm2 = vcmp.lt.f32.partialorder %v798_v16, 0.0004427343 }
 0x1a9   : > { %v730_v13 = vand.u32 2147483647, %v1408_v11  ;;  %1126 = vtanh.f32 %v646_v62  ;;  %v714_v0 = vmax.f32 %v1408_v11, 0.0 }
 0x1aa   : > { %v797_v21 = vmul.f32 %v1121_v6, %v796_v14 }
 0x1ab   : > { %v746_v15 = vsub.f32 0.0, %v730_v13 }
 0x1ad   : > { %v1123_v17 = vpop.eup %1122  ;;  %v764_v19 = vmul.f32 1.442695, %v746_v15 }
 0x1ae   : > { %v1125_v20 = vpop.eup %1124  ;;  %v801_v22 = vadd.f32 1.0, %v1123_v17  ;;  %v654_v23 = vpop.f32.mrf.mxu2  ;;  %v804_v25 = vmul.f32 -0.5, %v1123_v17  ;;  %v807_v35 = vand.u32 2147483647, %v1123_v17 }
 0x1af   : > { %v794_v24 = vmul.f32 0.6931472, %v1125_v20  ;;  %1128 = vpow2.f32 %v764_v19  ;;  %v1414_v26 = vadd.f32 %v1403_v60, %v654_v23  ;;  %v1127_v31 = vpop.eup %1126 }
 0x1b0   : > { %1130 = vlog2.f32 %v801_v22  ;;  %v805_v32 = vadd.f32 1.0, %v804_v25  ;;  %vm808_vm4 = vcmp.lt.f32.partialorder %v807_v35, 0.0004427343 }
 0x1b1   : > { %v800_v28 = vsel %vm799_vm2, %v797_v21, %v794_v24  ;;  %v731_v29 = vand.u32 2147483647, %v1414_v26  ;;  %1132 = vtanh.f32 %v649_v3  ;;  %v715_v19 = vmax.f32 %v1414_v26, 0.0 }
 0x1b2   : > { %v936_v30 = vadd.f32 %v800_v28, %v712_v27  ;;  %v806_v43 = vmul.f32 %v1123_v17, %v805_v32 }
 0x1b3   : > { %v747_v33 = vsub.f32 0.0, %v731_v29 }
 0x1b4   : > { %v952_v34 = vsel %vm695_vm3, %v1127_v31, %v936_v30 }
 0x1b5   : > { %v1129_v36 = vpop.eup %1128  ;;  %968 = vst [vmem:[%s1423_s16] sm:$0xff] %v952_v34  ;;  %v766_v37 = vmul.f32 1.442695, %v747_v33 }
 0x1b6   : > { %v1131_v38 = vpop.eup %1130  ;;  %v810_v39 = vadd.f32 1.0, %v1129_v36  ;;  %v813_v40 = vmul.f32 -0.5, %v1129_v36  ;;  %v657_v41 = vpop.f32.mrf.mxu2  ;;  %v816_v53 = vand.u32 2147483647, %v1129_v36 }
 0x1b7   : > { %v803_v42 = vmul.f32 0.6931472, %v1131_v38  ;;  %1134 = vpow2.f32 %v766_v37  ;;  %v1429_v44 = vadd.f32 %v1403_v60, %v657_v41  ;;  %v1133_v50 = vpop.eup %1132 }
 0x1b8   : > { %1136 = vlog2.f32 %v810_v39  ;;  %v814_v49 = vadd.f32 1.0, %v813_v40  ;;  %vm817_vm5 = vcmp.lt.f32.partialorder %v816_v53, 0.0004427343 }
 0x1b9   : > { %v809_v46 = vsel %vm808_vm4, %v806_v43, %v803_v42  ;;  %v732_v47 = vand.u32 2147483647, %v1429_v44  ;;  %1138 = vtanh.f32 %v1408_v11  ;;  %v716_v37 = vmax.f32 %v1429_v44, 0.0 }
 0x1ba   : > { %v937_v48 = vadd.f32 %v809_v46, %v713_v45  ;;  %v815_v57 = vmul.f32 %v1129_v36, %v814_v49 }
 0x1bb   : > { %v748_v51 = vsub.f32 0.0, %v732_v47 }
 0x1bc   : > { %v953_v52 = vsel %vm695_vm3, %v1133_v50, %v937_v48 }
 0x1bd   : > { %v1135_v54 = vpop.eup %1134  ;;  %969 = vst [vmem:[%s1423_s16 + $0x8] sm:$0xff] %v953_v52  ;;  %v768_v55 = vmul.f32 1.442695, %v748_v51 }
 0x1be   : > { %v1137_v56 = vpop.eup %1136  ;;  %v819_v58 = vadd.f32 1.0, %v1135_v54  ;;  %v660_v59 = vpop.f32.mrf.mxu2  ;;  %v822_v62 = vmul.f32 -0.5, %v1135_v54  ;;  %v825_v8 = vand.u32 2147483647, %v1135_v54 }
 0x1bf   : > { %v812_v61 = vmul.f32 0.6931472, %v1137_v56  ;;  %1140 = vpow2.f32 %v768_v55  ;;  %v1437_v63 = vadd.f32 %v1403_v60, %v660_v59  ;;  %v1139_v4 = vpop.eup %1138 }
 0x1c0   : > { %1142 = vlog2.f32 %v819_v58  ;;  %v823_v5 = vadd.f32 1.0, %v822_v62  ;;  %vm826_vm6 = vcmp.lt.f32.partialorder %v825_v8, 0.0004427343 }
 0x1c1   : > { %v818_v1 = vsel %vm817_vm5, %v815_v57, %v812_v61  ;;  %v733_v2 = vand.u32 2147483647, %v1437_v63  ;;  %1144 = vtanh.f32 %v1414_v26  ;;  %v717_v55 = vmax.f32 %v1437_v63, 0.0 }
 0x1c2   : > { %v938_v3 = vadd.f32 %v818_v1, %v714_v0  ;;  %v824_v16 = vmul.f32 %v1135_v54, %v823_v5 }
 0x1c3   : > { %v749_v6 = vsub.f32 0.0, %v733_v2 }
 0x1c4   : > { %v954_v7 = vsel %vm695_vm3, %v1139_v4, %v938_v3 }
 0x1c5   : > { %v1141_v9 = vpop.eup %1140  ;;  %970 = vst [vmem:[%s1423_s16 + $0x10] sm:$0xff] %v954_v7  ;;  %v770_v10 = vmul.f32 1.442695, %v749_v6 }
 0x1c6   : > { %v1143_v12 = vpop.eup %1142  ;;  %v828_v11 = vadd.f32 1.0, %v1141_v9  ;;  %v831_v13 = vmul.f32 -0.5, %v1141_v9  ;;  %v663_v14 = vpop.f32.mrf.mxu2  ;;  %v834_v28 = vand.u32 2147483647, %v1141_v9 }
 0x1c7   : > { %v821_v15 = vmul.f32 0.6931472, %v1143_v12  ;;  %1146 = vpow2.f32 %v770_v10  ;;  %v1446_v17 = vadd.f32 %v1403_v60, %v663_v14  ;;  %v1145_v24 = vpop.eup %1144 }
 0x1c8   : > { %1148 = vlog2.f32 %v828_v11  ;;  %v832_v23 = vadd.f32 1.0, %v831_v13  ;;  %vm835_vm7 = vcmp.lt.f32.partialorder %v834_v28, 0.0004427343 }
 0x1c9   : > { %v827_v20 = vsel %vm826_vm6, %v824_v16, %v821_v15  ;;  %v734_v21 = vand.u32 2147483647, %v1446_v17  ;;  %1150 = vtanh.f32 %v1429_v44  ;;  %v718_v10 = vmax.f32 %v1446_v17, 0.0 }
 0x1ca   : > { %v939_v22 = vadd.f32 %v827_v20, %v715_v19  ;;  %v833_v26 = vmul.f32 %v1141_v9, %v832_v23 }
 0x1cb   : > { %v750_v25 = vsub.f32 0.0, %v734_v21 }
 0x1cc   : > { %v955_v27 = vsel %vm695_vm3, %v1145_v24, %v939_v22 }
 0x1cd   : > { %v1147_v29 = vpop.eup %1146  ;;  %971 = vst [vmem:[%s1423_s16 + $0x18] sm:$0xff] %v955_v27  ;;  %v772_v30 = vmul.f32 1.442695, %v750_v25 }
 0x1ce   : > { %v1149_v31 = vpop.eup %1148  ;;  %v837_v32 = vadd.f32 1.0, %v1147_v29  ;;  %v666_v33 = vpop.f32.mrf.mxu2  ;;  %v840_v35 = vmul.f32 -0.5, %v1147_v29  ;;  %v843_v46 = vand.u32 2147483647, %v1147_v29 }
 0x1cf   : > { %v830_v34 = vmul.f32 0.6931472, %v1149_v31  ;;  %1152 = vpow2.f32 %v772_v30  ;;  %v1455_v36 = vadd.f32 %v1403_v60, %v666_v33  ;;  %v1151_v41 = vpop.eup %1150 }
 0x1d0   : > { %1154 = vlog2.f32 %v837_v32  ;;  %v841_v42 = vadd.f32 1.0, %v840_v35  ;;  %vm844_vm8 = vcmp.lt.f32.partialorder %v843_v46, 0.0004427343 }
 0x1d1   : > { %v836_v38 = vsel %vm835_vm7, %v833_v26, %v830_v34  ;;  %v735_v39 = vand.u32 2147483647, %v1455_v36  ;;  %1156 = vtanh.f32 %v1437_v63  ;;  %v719_v30 = vmax.f32 %v1455_v36, 0.0 }
 0x1d2   : > { %v940_v40 = vadd.f32 %v836_v38, %v716_v37  ;;  %v842_v53 = vmul.f32 %v1147_v29, %v841_v42 }
 0x1d3   : > { %v751_v43 = vsub.f32 0.0, %v735_v39 }
 0x1d4   : > { %v956_v45 = vsel %vm695_vm3, %v1151_v41, %v940_v40 }
 0x1d5   : > { %v1153_v47 = vpop.eup %1152  ;;  %972 = vst [vmem:[%s1423_s16 + $0x20] sm:$0xff] %v956_v45  ;;  %v774_v48 = vmul.f32 1.442695, %v751_v43 }
 0x1d6   : > { %v1155_v49 = vpop.eup %1154  ;;  %v846_v44 = vadd.f32 1.0, %v1153_v47  ;;  %v849_v50 = vmul.f32 -0.5, %v1153_v47  ;;  %v669_v51 = vpop.f32.mrf.mxu2  ;;  %v852_v1 = vand.u32 2147483647, %v1153_v47 }
 0x1d7   : > { %v839_v52 = vmul.f32 0.6931472, %v1155_v49  ;;  %1158 = vpow2.f32 %v774_v48  ;;  %v1464_v54 = vadd.f32 %v1403_v60, %v669_v51  ;;  %v1157_v61 = vpop.eup %1156 }
 0x1d8   : > { %1160 = vlog2.f32 %v846_v44  ;;  %v850_v59 = vadd.f32 1.0, %v849_v50  ;;  %vm853_vm9 = vcmp.lt.f32.partialorder %v852_v1, 0.0004427343 }
 0x1d9   : > { %v845_v56 = vsel %vm844_vm8, %v842_v53, %v839_v52  ;;  %v736_v57 = vand.u32 2147483647, %v1464_v54  ;;  %1162 = vtanh.f32 %v1446_v17  ;;  %v720_v48 = vmax.f32 %v1464_v54, 0.0 }
 0x1da   : > { %v941_v58 = vadd.f32 %v845_v56, %v717_v55  ;;  %v851_v63 = vmul.f32 %v1153_v47, %v850_v59 }
 0x1db   : > { %v752_v62 = vsub.f32 0.0, %v736_v57 }
 0x1dc   : > { %v957_v0 = vsel %vm695_vm3, %v1157_v61, %v941_v58 }
 0x1dd   : > { %v1159_v2 = vpop.eup %1158  ;;  %973 = vst [vmem:[%s1423_s16 + $0x28] sm:$0xff] %v957_v0  ;;  %v776_v3 = vmul.f32 1.442695, %v752_v62 }
 0x1de   : > { %v1161_v4 = vpop.eup %1160  ;;  %v855_v5 = vadd.f32 1.0, %v1159_v2  ;;  %v672_v6 = vpop.f32.mrf.mxu2  ;;  %v858_v8 = vmul.f32 -0.5, %v1159_v2  ;;  %v861_v20 = vand.u32 2147483647, %v1159_v2 }
 0x1df   : > { %v848_v7 = vmul.f32 0.6931472, %v1161_v4  ;;  %1164 = vpow2.f32 %v776_v3  ;;  %v1473_v9 = vadd.f32 %v1403_v60, %v672_v6  ;;  %v1163_v14 = vpop.eup %1162 }
 0x1e0   : > { %1166 = vlog2.f32 %v855_v5  ;;  %v859_v15 = vadd.f32 1.0, %v858_v8  ;;  %vm862_vm10 = vcmp.lt.f32.partialorder %v861_v20, 0.0004427343 }
 0x1e1   : > { %v854_v12 = vsel %vm853_vm9, %v851_v63, %v848_v7  ;;  %v737_v11 = vand.u32 2147483647, %v1473_v9  ;;  %1168 = vtanh.f32 %v1455_v36  ;;  %v721_v1 = vmax.f32 %v1473_v9, 0.0 }
 0x1e2   : > { %v942_v13 = vadd.f32 %v854_v12, %v718_v10  ;;  %v860_v28 = vmul.f32 %v1159_v2, %v859_v15 }
 0x1e3   : > { %v753_v16 = vsub.f32 0.0, %v737_v11 }
 0x1e4   : > { %v958_v19 = vsel %vm695_vm3, %v1163_v14, %v942_v13 }
 0x1e5   : > { %v1165_v21 = vpop.eup %1164  ;;  %974 = vst [vmem:[%s1423_s16 + $0x30] sm:$0xff] %v958_v19  ;;  %v778_v22 = vmul.f32 1.442695, %v753_v16 }
 0x1e6   : > { %v1167_v23 = vpop.eup %1166  ;;  %v864_v17 = vadd.f32 1.0, %v1165_v21  ;;  %v867_v24 = vmul.f32 -0.5, %v1165_v21  ;;  %v675_v25 = vpop.f32.mrf.mxu2  ;;  %v870_v38 = vand.u32 2147483647, %v1165_v21 }
 0x1e7   : > { %v857_v27 = vmul.f32 0.6931472, %v1167_v23  ;;  %1170 = vpow2.f32 %v778_v22  ;;  %v1482_v29 = vadd.f32 %v1403_v60, %v675_v25  ;;  %v1169_v34 = vpop.eup %1168 }
 0x1e8   : > { %1172 = vlog2.f32 %v864_v17  ;;  %v868_v33 = vadd.f32 1.0, %v867_v24  ;;  %vm871_vm11 = vcmp.lt.f32.partialorder %v870_v38, 0.0004427343 }
 0x1e9   : > { %v863_v31 = vsel %vm862_vm10, %v860_v28, %v857_v27  ;;  %v738_v26 = vand.u32 2147483647, %v1482_v29  ;;  %1174 = vtanh.f32 %v1464_v54  ;;  %v722_v16 = vmax.f32 %v1482_v29, 0.0 }
 0x1ea   : > { %v943_v32 = vadd.f32 %v863_v31, %v719_v30  ;;  %v869_v36 = vmul.f32 %v1165_v21, %v868_v33 }
 0x1eb   : > { %v754_v35 = vsub.f32 0.0, %v738_v26 }
 0x1ec   : > { %v959_v37 = vsel %vm695_vm3, %v1169_v34, %v943_v32 }
 0x1ed   : > { %v1171_v39 = vpop.eup %1170  ;;  %975 = vst [vmem:[%s1423_s16 + $0x38] sm:$0xff] %v959_v37  ;;  %v780_v40 = vmul.f32 1.442695, %v754_v35 }
 0x1ee   : > { %v1173_v41 = vpop.eup %1172  ;;  %v873_v42 = vadd.f32 1.0, %v1171_v39  ;;  %v678_v43 = vpop.f32.mrf.mxu2  ;;  %v876_v46 = vmul.f32 -0.5, %v1171_v39  ;;  %v879_v56 = vand.u32 2147483647, %v1171_v39 }
 0x1ef   : > { %v866_v45 = vmul.f32 0.6931472, %v1173_v41  ;;  %1176 = vpow2.f32 %v780_v40  ;;  %v1491_v47 = vadd.f32 %v1403_v60, %v678_v43  ;;  %v1175_v51 = vpop.eup %1174 }
 0x1f0   : > { %1178 = vlog2.f32 %v873_v42  ;;  %v877_v52 = vadd.f32 1.0, %v876_v46  ;;  %vm880_vm12 = vcmp.lt.f32.partialorder %v879_v56, 0.0004427343 }
 0x1f1   : > { %v872_v49 = vsel %vm871_vm11, %v869_v36, %v866_v45  ;;  %v739_v44 = vand.u32 2147483647, %v1491_v47  ;;  %1180 = vtanh.f32 %v1473_v9  ;;  %v723_v32 = vmax.f32 %v1491_v47, 0.0 }
 0x1f2   : > { %v944_v50 = vadd.f32 %v872_v49, %v720_v48  ;;  %v878_v62 = vmul.f32 %v1171_v39, %v877_v52 }
 0x1f3   : > { %v755_v53 = vsub.f32 0.0, %v739_v44 }
 0x1f4   : > { %v960_v55 = vsel %vm695_vm3, %v1175_v51, %v944_v50 }
 0x1f5   : > { %v1177_v57 = vpop.eup %1176  ;;  %976 = vst [vmem:[%s1423_s16 + $0x40] sm:$0xff] %v960_v55  ;;  %v782_v58 = vmul.f32 1.442695, %v755_v53 }
 0x1f6   : > { %v1179_v59 = vpop.eup %1178  ;;  %v882_v54 = vadd.f32 1.0, %v1177_v57  ;;  %v885_v0 = vmul.f32 -0.5, %v1177_v57  ;;  %v888_v6 = vand.u32 2147483647, %v1177_v57 }
 0x1f7   : > { %v875_v61 = vmul.f32 0.6931472, %v1179_v59  ;;  %1182 = vpow2.f32 %v782_v58  ;;  %v1181_v4 = vpop.eup %1180 }
 0x1f8   : > { %1184 = vlog2.f32 %v882_v54  ;;  %v886_v63 = vadd.f32 1.0, %v885_v0  ;;  %vm889_vm13 = vcmp.lt.f32.partialorder %v888_v6, 0.0004427343 }
 0x1f9   : > { %v881_v2 = vsel %vm880_vm12, %v878_v62, %v875_v61  ;;  %1186 = vtanh.f32 %v1482_v29 }
 0x1fa   : > { %v945_v3 = vadd.f32 %v881_v2, %v721_v1  ;;  %v887_v13 = vmul.f32 %v1177_v57, %v886_v63 }
 0x1fc   : > { %v961_v5 = vsel %vm695_vm3, %v1181_v4, %v945_v3  ;;  %v681_v7 = vpop.f32.mrf.mxu3 }
 0x1fd   : > { %v1183_v8 = vpop.eup %1182  ;;  %977 = vst [vmem:[%s1423_s16 + $0x48] sm:$0xff] %v961_v5  ;;  %v1505_v10 = vadd.f32 %v1403_v60, %v681_v7 }
 0x1fe   : > { %v1185_v12 = vpop.eup %1184  ;;  %v891_v9 = vadd.f32 1.0, %v1183_v8  ;;  %v894_v14 = vmul.f32 -0.5, %v1183_v8  ;;  %v897_v25 = vand.u32 2147483647, %v1183_v8 }
 0x1ff   : > { %v884_v11 = vmul.f32 0.6931472, %v1185_v12  ;;  %v740_v15 = vand.u32 2147483647, %v1505_v10  ;;  %v1187_v22 = vpop.eup %1186  ;;  %v724_v58 = vmax.f32 %v1505_v10, 0.0 }
 0x200   : > { %1188 = vlog2.f32 %v891_v9  ;;  %v895_v23 = vadd.f32 1.0, %v894_v14  ;;  %vm898_vm14 = vcmp.lt.f32.partialorder %v897_v25, 0.0004427343 }
 0x201   : > { %v890_v19 = vsel %vm889_vm13, %v887_v13, %v884_v11  ;;  %v756_v20 = vsub.f32 0.0, %v740_v15  ;;  %1190 = vtanh.f32 %v1491_v47 }
 0x202   : > { %v946_v21 = vadd.f32 %v890_v19, %v722_v16  ;;  %v896_v31 = vmul.f32 %v1183_v8, %v895_v23 }
 0x203   : > { %v784_v17 = vmul.f32 1.442695, %v756_v20 }
 0x204   : > { %v962_v24 = vsel %vm695_vm3, %v1187_v22, %v946_v21  ;;  %v684_v27 = vpop.f32.mrf.mxu3 }
 0x205   : > { %978 = vst [vmem:[%s1423_s16 + $0x50] sm:$0xff] %v962_v24  ;;  %1192 = vpow2.f32 %v784_v17  ;;  %v685_v28 = vadd.f32 %v1403_v60, %v684_v27 }
 0x206   : > { %v1189_v29 = vpop.eup %1188 }
 0x207   : > { %v893_v30 = vmul.f32 0.6931472, %v1189_v29  ;;  %v741_v26 = vand.u32 2147483647, %v685_v28  ;;  %v1191_v35 = vpop.eup %1190 }
 0x209   : > { %v899_v33 = vsel %vm898_vm14, %v896_v31, %v893_v30  ;;  %v757_v34 = vsub.f32 0.0, %v741_v26 }
 0x20a   : > { %v947_v37 = vadd.f32 %v899_v33, %v723_v32 }
 0x20b   : > { %v1193_v38 = vpop.eup %1192  ;;  %v786_v39 = vmul.f32 1.442695, %v757_v34 }
 0x20c   : > { %v963_v40 = vsel %vm695_vm3, %v1191_v35, %v947_v37  ;;  %v900_v41 = vadd.f32 1.0, %v1193_v38  ;;  %v903_v36 = vmul.f32 -0.5, %v1193_v38  ;;  %v687_v42 = vpop.f32.mrf.mxu3  ;;  %v906_v48 = vand.u32 2147483647, %v1193_v38 }
 0x20d   : > { %979 = vst [vmem:[%s1423_s16 + $0x58] sm:$0xff] %v963_v40  ;;  %1194 = vpow2.f32 %v786_v39  ;;  %v688_v43 = vadd.f32 %v1403_v60, %v687_v42 }
 0x20e   : > { %1196 = vlog2.f32 %v900_v41  ;;  %v904_v46 = vadd.f32 1.0, %v903_v36  ;;  %vm907_vm15 = vcmp.lt.f32.partialorder %v906_v48, 0.0004427343 }
 0x20f   : > { %v742_v45 = vand.u32 2147483647, %v688_v43  ;;  %1198 = vtanh.f32 %v1505_v10  ;;  %v725_v10 = vmax.f32 %v685_v28, 0.0  ;;  %v726_v17 = vmax.f32 %v688_v43, 0.0 }
 0x210   : > { %v905_v51 = vmul.f32 %v1193_v38, %v904_v46 }
 0x211   : > { %v758_v47 = vsub.f32 0.0, %v742_v45 }
 0x213   : > { %v1195_v49 = vpop.eup %1194  ;;  %v788_v44 = vmul.f32 1.442695, %v758_v47 }
 0x214   : > { %v1197_v50 = vpop.eup %1196  ;;  %v909_v52 = vadd.f32 1.0, %v1195_v49  ;;  %v690_v53 = vpop.f32.mrf.mxu3  ;;  %v912_v56 = vmul.f32 -0.5, %v1195_v49  ;;  %v915_v3 = vand.u32 2147483647, %v1195_v49 }
 0x215   : > { %v902_v55 = vmul.f32 0.6931472, %v1197_v50  ;;  %1200 = vpow2.f32 %v788_v44  ;;  %v691_v57 = vadd.f32 %v1403_v60, %v690_v53  ;;  %v1199_v62 = vpop.eup %1198 }
 0x216   : > { %1202 = vlog2.f32 %v909_v52  ;;  %v913_v0 = vadd.f32 1.0, %v912_v56  ;;  %vm916_vm0 = vcmp.lt.f32.partialorder %v915_v3, 0.0004427343 }
 0x217   : > { %v908_v59 = vsel %vm907_vm15, %v905_v51, %v902_v55  ;;  %v743_v54 = vand.u32 2147483647, %v691_v57  ;;  %1204 = vtanh.f32 %v685_v28  ;;  %v727_v33 = vmax.f32 %v691_v57, 0.0 }
 0x218   : > { %v948_v61 = vadd.f32 %v908_v59, %v724_v58  ;;  %v914_v7 = vmul.f32 %v1195_v49, %v913_v0 }
 0x219   : > { %v759_v1 = vsub.f32 0.0, %v743_v54 }
 0x21a   : > { %v964_v2 = vsel %vm695_vm3, %v1199_v62, %v948_v61 }
 0x21b   : > { %v1201_v4 = vpop.eup %1200  ;;  %980 = vst [vmem:[%s1423_s16 + $0x60] sm:$0xff] %v964_v2  ;;  %v790_v63 = vmul.f32 1.442695, %v759_v1 }
 0x21c   : > { %v1203_v5 = vpop.eup %1202  ;;  %v918_v60 = vadd.f32 1.0, %v1201_v4  ;;  %v921_v8 = vmul.f32 -0.5, %v1201_v4  ;;  %v924_v15 = vand.u32 2147483647, %v1201_v4 }
 0x21d   : > { %v911_v6 = vmul.f32 0.6931472, %v1203_v5  ;;  %1206 = vpow2.f32 %v790_v63  ;;  %v1205_v11 = vpop.eup %1204 }
 0x21e   : > { %1208 = vlog2.f32 %v918_v60  ;;  %v922_v13 = vadd.f32 1.0, %v921_v8  ;;  %vm925_vm1 = vcmp.lt.f32.partialorder %v924_v15, 0.0004427343 }
 0x21f   : > { %v917_v12 = vsel %vm916_vm0, %v914_v7, %v911_v6  ;;  %1210 = vtanh.f32 %v688_v43 }
 0x220   : > { %v949_v9 = vadd.f32 %v917_v12, %v725_v10  ;;  %v923_v22 = vmul.f32 %v1201_v4, %v922_v13 }
 0x222   : > { %v965_v14 = vsel %vm695_vm3, %v1205_v11, %v949_v9 }
 0x223   : > { %v1207_v16 = vpop.eup %1206  ;;  %981 = vst [vmem:[%s1423_s16 + $0x68] sm:$0xff] %v965_v14 }
 0x224   : > { %v1209_v19 = vpop.eup %1208  ;;  %v927_v20 = vadd.f32 1.0, %v1207_v16  ;;  %v930_v23 = vmul.f32 -0.5, %v1207_v16  ;;  %v933_v30 = vand.u32 2147483647, %v1207_v16 }
 0x225   : > { %v920_v21 = vmul.f32 0.6931472, %v1209_v19  ;;  %v1211_v27 = vpop.eup %1210 }
 0x226   : > { %1212 = vlog2.f32 %v927_v20  ;;  %v931_v28 = vadd.f32 1.0, %v930_v23  ;;  %vm934_vm2 = vcmp.lt.f32.partialorder %v933_v30, 0.0004427343 }
 0x227   : > { %v926_v24 = vsel %vm925_vm1, %v923_v22, %v920_v21  ;;  %1214 = vtanh.f32 %v691_v57 }
 0x228   : > { %v950_v25 = vadd.f32 %v926_v24, %v726_v17  ;;  %v932_v32 = vmul.f32 %v1207_v16, %v931_v28 }
 0x22a   : > { %v966_v29 = vsel %vm695_vm3, %v1211_v27, %v950_v25 }
 0x22b   : > { %982 = vst [vmem:[%s1423_s16 + $0x70] sm:$0xff] %v966_v29 }
 0x22c   : > { %v1213_v31 = vpop.eup %1212 }
 0x22d   : > { %v929_v26 = vmul.f32 0.6931472, %v1213_v31  ;;  %v1215_v37 = vpop.eup %1214 }
 0x22f   : > { %v935_v34 = vsel %vm934_vm2, %v932_v32, %v929_v26 }
 0x230   : > { %v951_v35 = vadd.f32 %v935_v34, %v727_v33 }
 0x232   : > { %v967_v38 = vsel %vm695_vm3, %v1215_v37, %v951_v35 }
 0x233   : > { %983 = vst [vmem:[%s1423_s16 + $0x78] sm:$0xff] %v967_v38 }
 0x234 PF: > { %s17_s24 = sadd.s32 1, %s1222_s24  }
 0x235   : > { %p14_p4 = scmp.ge.s32.totalorder %s17_s24, 4  }
 0x237   :  { %16 = sbr.rel (!%p14_p4) target bundleno = 1 (0x1), region = 78 }

</bundles_post_ra>
